<compile_context>
chip_gen: v7x
topology: tpu7x:2x2x1
jax: 0.10.0
libtpu: 0.0.40
codegen_flags: <defaults>
</compile_context>

<pallas_src>
import functools

import jax
import jax.numpy as jnp
import numpy as np
from jax.experimental import pallas as pl
from jax.experimental.pallas import tpu as pltpu

EPS = 1e-5

# MXU operand dtype for the two conv matmuls.  The review asks for bf16 on
# v5e/v6e/v7x (2-4x MXU throughput at production channel counts; BN absorbs
# the quantization error).  The demo default stays f32 so the self-check
# matches the f32 nn.Module semantics tightly at the toy shape, where the MXU
# is <7% utilized either way; flip this one constant for production.
MXU_DTYPE = jnp.float32

# Explicit scoped-VMEM cap (review: set it explicitly; blocks here are
# KB-sized, well under v7x's 64 MiB physical VMEM).
VMEM_LIMIT = 32 * 1024 * 1024


# ----------------------------------------------------------------------------
# Kernels
# ----------------------------------------------------------------------------
def _conv_body(x, b_ref, fold_ref, y_ref, stat_ref, cin):
    """Banded-weight 3x3 conv on a lane-dense (H, W*cin) slab + BN partial stats."""
    H, WC = x.shape
    W = WC // cin
    # Zero-pad the 1-pixel halo in-register (concats only: no masked
    # sub-(8,128) scratch stores, no mid-buffer VMEM round trip).
    zcol = jnp.zeros((H, cin), jnp.float32)
    zrow = jnp.zeros((1, (W + 2) * cin), jnp.float32)
    xp = jnp.concatenate(
        [zrow, jnp.concatenate([zcol, x, zcol], axis=1), zrow], axis=0
    ).astype(MXU_DTYPE)                                   # (H+2, (W+2)*cin)

    # 3x3 conv == 3 banded matmuls (one per kernel row).  Activations stay
    # lane-dense and the matmul N dim is W*cout (full 128 lanes at the test
    # shape) -- this packs spatial columns into the MXU N dim, as suggested
    # for small channel counts.  Accumulation is f32.
    y = jnp.dot(xp[0:H], b_ref[0], preferred_element_type=jnp.float32)
    y = y + jnp.dot(xp[1:H + 1], b_ref[1], preferred_element_type=jnp.float32)
    y = y + jnp.dot(xp[2:H + 2], b_ref[2], preferred_element_type=jnp.float32)
    y_ref[0] = y                                          # full-lane store

    # BatchNorm partial stats while y is live: sublane reduce over rows, then
    # a W-strided lane fold done as a tiny 0/1 matmul (avoids lane-layout-
    # changing reshapes).
    rr = jnp.concatenate([jnp.sum(y, axis=0, keepdims=True),
                          jnp.sum(y * y, axis=0, keepdims=True)], axis=0)
    stat_ref[0] = jnp.dot(rr, fold_ref[...], preferred_element_type=jnp.float32)


def conv_stats_kernel(x_ref, b_ref, fold_ref, y_ref, stat_ref, *, cin):
    """Pass 1: conv1 on the raw input slab + BN1 partial stats."""
    _conv_body(x_ref[0], b_ref, fold_ref, y_ref, stat_ref, cin)


def bn_relu_conv_stats_kernel(x_ref, scale_ref, shift_ref, b_ref, fold_ref,
                              y_ref, stat_ref, *, cin):
    """Pass 2: BN1 (folded affine) + ReLU in lane-dense layout, conv2, BN2 stats."""
    x = jnp.maximum(x_ref[0] * scale_ref[...] + shift_ref[...], 0.0)
    _conv_body(x, b_ref, fold_ref, y_ref, stat_ref, cin)


def bn_relu_kernel(y_ref, scale_ref, shift_ref, o_ref):
    """Pass 3: BN2 (folded affine) + ReLU, lane-dense store."""
    o_ref[0] = jnp.maximum(y_ref[0] * scale_ref[...] + shift_ref[...], 0.0)


# ----------------------------------------------------------------------------
# Host-side helpers (tiny; weight prep happens once per model)
# ----------------------------------------------------------------------------
def _banded_conv_weights(w_oihw, width):
    """OIHW 3x3 weights -> 3 banded matrices B[kh] of shape ((W+2)*Cin, W*Cout)
    such that conv(x)[h, :] == sum_kh  xpad_rows[h + kh] @ B[kh]."""
    w = np.asarray(jax.device_get(w_oihw), np.float32)    # (Cout, Cin, 3, 3)
    c_out, c_in = w.shape[0], w.shape[1]
    bands = np.zeros((3, (width + 2) * c_in, width * c_out), np.float32)
    for kh in range(3):
        for kw in range(3):
            blk = w[:, :, kh, kw].T                       # (Cin, Cout)
            for col in range(width):
                u = col + kw
                bands[kh, u * c_in:(u + 1) * c_in,
                      col * c_out:(col + 1) * c_out] = blk
    return jnp.asarray(bands).astype(MXU_DTYPE)


def _channel_fold_matrix(width, channels):
    """(W*C, C) 0/1 matrix folding a lane-dense (., W*C) row into per-channel sums."""
    return jnp.asarray(np.tile(np.eye(channels, dtype=np.float32), (width, 1)))


def _finalize_bn(stats, gamma, beta, count, width):
    """Combine per-block partial (sum, sumsq) into a folded per-lane BN affine."""
    # TODO(synk): use shifted/Welford-style accumulation at production N*H*W;
    # E[x^2] - mean^2 in f32 can cancel catastrophically for very large counts.
    s = jnp.sum(stats[:, 0, :], axis=0)
    q = jnp.sum(stats[:, 1, :], axis=0)
    mean = s / count
    var = jnp.maximum(q / count - mean * mean, 0.0)
    rstd = jax.lax.rsqrt(var + EPS)
    scale = gamma * rstd
    shift = beta - mean * scale
    # Tile W times across lanes so BN/ReLU run in the lane-dense (rows, W*C) layout.
    return jnp.tile(scale, width)[None, :], jnp.tile(shift, width)[None, :]


# ----------------------------------------------------------------------------
# Wrapper
# ----------------------------------------------------------------------------
def double_conv(x_nchw, params):
    """Pallas DoubleConv forward.  x_nchw: (N, Cin, H, W) f32 -> (N, Cout, H, W)."""
    w1, g1, b1, w2, g2, b2 = params
    N, Cin, H, W = x_nchw.shape
    Cmid, Cout = w1.shape[0], w2.shape[0]

    B1 = _banded_conv_weights(w1, W)          # (3, (W+2)*Cin,  W*Cmid)
    B2 = _banded_conv_weights(w2, W)          # (3, (W+2)*Cmid, W*Cout)
    fold1 = _channel_fold_matrix(W, Cmid)
    fold2 = _channel_fold_matrix(W, Cout)

    # NCHW -> lane-dense rows (N, H, W*Cin).  W*Cmid = W*Cout = 128 at the test
    # shape, so all intermediate / output stores are unmasked full-lane vst;
    # other shapes stay correct but fall back to masked stores.
    # TODO(synk): keep NHWC end-to-end in the surrounding model (or fold this
    # transpose into the kernel) to drop the extra HBM pass.
    x_rows = jnp.transpose(x_nchw.astype(jnp.float32),
                           (0, 2, 3, 1)).reshape(N, H, W * Cin)

    count = float(N * H * W)
    cp = pltpu.CompilerParams(
        dimension_semantics=("parallel",),    # shards the N grid across v7x's 2 TCs
        vmem_limit_bytes=VMEM_LIMIT)
    full = lambda *shape: pl.BlockSpec(shape, lambda n: (0,) * len(shape))

    # ---- pass 1: conv1 + BN1 partial stats (grid over N, pipelined) ----
    flops1 = 2 * N * H * W * 9 * Cin * Cmid
    bytes1 = 4 * (x_rows.size + B1.size + fold1.size
                  + N * H * W * Cmid + N * 2 * Cmid)
    y1_raw, stats1 = pl.pallas_call(
        functools.partial(conv_stats_kernel, cin=Cin),
        grid=(N,),
        in_specs=[pl.BlockSpec((1, H, W * Cin), lambda n: (n, 0, 0)),
                  full(3, (W + 2) * Cin, W * Cmid),
                  full(W * Cmid, Cmid)],
        out_specs=(pl.BlockSpec((1, H, W * Cmid), lambda n: (n, 0, 0)),
                   pl.BlockSpec((1, 2, Cmid), lambda n: (n, 0, 0))),
        out_shape=(jax.ShapeDtypeStruct((N, H, W * Cmid), jnp.float32),
                   jax.ShapeDtypeStruct((N, 2, Cmid), jnp.float32)),
        compiler_params=cp,
        cost_estimate=pl.CostEstimate(flops=flops1, transcendentals=0,
                                      bytes_accessed=bytes1),
    )(x_rows, B1, fold1)

    # Two-phase BN: stats must be global before any block can be normalized.
    a1, c1 = _finalize_bn(stats1, g1, b1, count, W)        # (1, W*Cmid) each

    # ---- pass 2: BN1 + ReLU (lane-dense) + conv2 + BN2 partial stats ----
    flops2 = 2 * N * H * W * 9 * Cmid * Cout
    bytes2 = 4 * (y1_raw.size + B2.size + fold2.size + 2 * W * Cmid
                  + N * H * W * Cout + N * 2 * Cout)
    y2_raw, stats2 = pl.pallas_call(
        functools.partial(bn_relu_conv_stats_kernel, cin=Cmid),
        grid=(N,),
        in_specs=[pl.BlockSpec((1, H, W * Cmid), lambda n: (n, 0, 0)),
                  full(1, W * Cmid),
                  full(1, W * Cmid),
                  full(3, (W + 2) * Cmid, W * Cout),
                  full(W * Cout, Cout)],
        out_specs=(pl.BlockSpec((1, H, W * Cout), lambda n: (n, 0, 0)),
                   pl.BlockSpec((1, 2, Cout), lambda n: (n, 0, 0))),
        out_shape=(jax.ShapeDtypeStruct((N, H, W * Cout), jnp.float32),
                   jax.ShapeDtypeStruct((N, 2, Cout), jnp.float32)),
        compiler_params=cp,
        cost_estimate=pl.CostEstimate(flops=flops2, transcendentals=0,
                                      bytes_accessed=bytes2),
    )(y1_raw, a1, c1, B2, fold2)

    a2, c2 = _finalize_bn(stats2, g2, b2, count, W)        # (1, W*Cout) each

    # ---- pass 3: BN2 + ReLU, lane-dense store ----
    out_rows = pl.pallas_call(
        bn_relu_kernel,
        grid=(N,),
        in_specs=[pl.BlockSpec((1, H, W * Cout), lambda n: (n, 0, 0)),
                  full(1, W * Cout),
                  full(1, W * Cout)],
        out_specs=pl.BlockSpec((1, H, W * Cout), lambda n: (n, 0, 0)),
        out_shape=jax.ShapeDtypeStruct((N, H, W * Cout), jnp.float32),
        compiler_params=cp,
        cost_estimate=pl.CostEstimate(flops=3 * N * H * W * Cout, transcendentals=0,
                                      bytes_accessed=4 * 2 * N * H * W * Cout),
    )(y2_raw, a2, c2)

    out_nhwc = out_rows.reshape(N, H, W, Cout)
    return jnp.transpose(out_nhwc, (0, 3, 1, 2))           # back to NCHW


# ----------------------------------------------------------------------------
# Pure-JAX reference (identical training-mode BN semantics)
# ----------------------------------------------------------------------------
def double_conv_ref(x_nchw, params):
    w1, g1, b1, w2, g2, b2 = params

    def conv(x, w):
        return jax.lax.conv_general_dilated(
            x, w, window_strides=(1, 1), padding=((1, 1), (1, 1)),
            dimension_numbers=('NCHW', 'OIHW', 'NCHW'),
            precision=jax.lax.Precision.HIGHEST)

    def bn_relu(y, g, b):
        mean = jnp.mean(y, axis=(0, 2, 3), keepdims=True)
        var = jnp.mean((y - mean) ** 2, axis=(0, 2, 3), keepdims=True)
        y = (y - mean) * jax.lax.rsqrt(var + EPS)
        y = y * g.reshape(1, -1, 1, 1) + b.reshape(1, -1, 1, 1)
        return jnp.maximum(y, 0.0)

    y = bn_relu(conv(x_nchw, w1), g1, b1)
    return bn_relu(conv(y, w2), g2, b2)


if __name__ == "__main__":
    N, Cin, H, W = 2, 4, 16, 16
    Cout = 8
    Cmid = Cout  # mid_channels defaults to out_channels

    key = jax.random.PRNGKey(0)
    k_x, k_w1, k_w2, k_g1, k_b1, k_g2, k_b2 = jax.random.split(key, 7)

    x = jax.random.normal(k_x, (N, Cin, H, W), jnp.float32)
    # Deterministic synthetic parameters (shapes from nn.Conv2d / nn.BatchNorm2d).
    w1 = jax.random.normal(k_w1, (Cmid, Cin, 3, 3), jnp.float32) * 0.2
    w2 = jax.random.normal(k_w2, (Cout, Cmid, 3, 3), jnp.float32) * 0.2
    g1 = jax.random.uniform(k_g1, (Cmid,), jnp.float32, 0.5, 1.5)
    b1 = jax.random.normal(k_b1, (Cmid,), jnp.float32) * 0.1
    g2 = jax.random.uniform(k_g2, (Cout,), jnp.float32, 0.5, 1.5)
    b2 = jax.random.normal(k_b2, (Cout,), jnp.float32) * 0.1
    params = (w1, g1, b1, w2, g2, b2)

    out = jax.block_until_ready(double_conv(x, params))
    ref = jax.block_until_ready(double_conv_ref(x, params))

    assert out.shape == (N, Cout, H, W), out.shape
    # Tolerance covers MXU pass precision only; any structural bug (tap
    # misalignment, wrong padding, wrong BN stats) produces O(0.1+) errors.
    tol = 1e-2 if MXU_DTYPE == jnp.float32 else 5e-2
    max_err = float(jnp.max(jnp.abs(out - ref)))
    assert jnp.allclose(out, ref, atol=tol, rtol=tol), max_err
    print("KERNEL_OK")
</pallas_src>

<mosaic_0001>
module attributes {stable_mosaic.version = 11 : i64} {
  func.func @conv_stats_kernel(%arg0: i32, %arg1: memref<1x16x64xf32, #tpu.memory_space<vmem>>, %arg2: memref<3x72x128xf32, #tpu.memory_space<vmem>>, %arg3: memref<128x8xf32, #tpu.memory_space<vmem>>, %arg4: memref<1x16x128xf32, #tpu.memory_space<vmem>>, %arg5: memref<1x2x8xf32, #tpu.memory_space<vmem>>) attributes {dimension_semantics = [#tpu.dimension_semantics<parallel>], iteration_bounds = array<i64: 2>, scalar_prefetch = 0 : i64, scratch_operands = 0 : i64, tpu.core_type = #tpu.core_type<tc>, window_params = [{transform_indices = @transform_0, window_bounds = array<i64: 1, 16, 64>}, {pipeline_mode = #tpu.pipeline_mode<synchronous>, transform_indices = @transform_1, window_bounds = array<i64: 3, 72, 128>}, {pipeline_mode = #tpu.pipeline_mode<synchronous>, transform_indices = @transform_2, window_bounds = array<i64: 128, 8>}, {transform_indices = @transform_3, window_bounds = array<i64: 1, 16, 128>}, {transform_indices = @transform_4, window_bounds = array<i64: 1, 2, 8>}]} {
    %c0 = arith.constant 0 : index
    %c0_0 = arith.constant 0 : index
    %c0_1 = arith.constant 0 : index
    %0 = vector.load %arg1[%c0, %c0_0, %c0_1] : memref<1x16x64xf32, #tpu.memory_space<vmem>>, vector<1x16x64xf32>
    %1 = vector.shape_cast %0 : vector<1x16x64xf32> to vector<16x64xf32>
    %cst = arith.constant 0.000000e+00 : f32
    %2 = vector.broadcast %cst : f32 to vector<16x4xf32>
    %cst_2 = arith.constant 0.000000e+00 : f32
    %3 = vector.broadcast %cst_2 : f32 to vector<1x72xf32>
    %4 = tpu.concatenate %2, %1, %2 in 1 : vector<16x4xf32>, vector<16x64xf32>, vector<16x4xf32> -> vector<16x72xf32>
    %5 = tpu.concatenate %3, %4, %3 in 0 : vector<1x72xf32>, vector<16x72xf32>, vector<1x72xf32> -> vector<18x72xf32>
    %6 = vector.extract_strided_slice %5 {offsets = [0, 0], sizes = [16, 72], strides = [1, 1]} : vector<18x72xf32> to vector<16x72xf32>
    %c0_3 = arith.constant 0 : index
    %c0_4 = arith.constant 0 : index
    %c0_5 = arith.constant 0 : index
    %7 = vector.load %arg2[%c0_3, %c0_4, %c0_5] : memref<3x72x128xf32, #tpu.memory_space<vmem>>, vector<1x72x128xf32>
    %8 = vector.shape_cast %7 : vector<1x72x128xf32> to vector<72x128xf32>
    %cst_6 = arith.constant dense<0.000000e+00> : vector<16x128xf32>
    %9 = tpu.matmul %6, %8, %cst_6 {dimension_numbers = #tpu.dot_dimension_numbers<[1], [0], [0], [1], [0, 0, 1, 1], [], []>} : vector<16x72xf32>, vector<72x128xf32>, vector<16x128xf32> -> vector<16x128xf32>
    %10 = vector.extract_strided_slice %5 {offsets = [1, 0], sizes = [16, 72], strides = [1, 1]} : vector<18x72xf32> to vector<16x72xf32>
    %c1 = arith.constant 1 : index
    %c0_7 = arith.constant 0 : index
    %c0_8 = arith.constant 0 : index
    %11 = vector.load %arg2[%c1, %c0_7, %c0_8] : memref<3x72x128xf32, #tpu.memory_space<vmem>>, vector<1x72x128xf32>
    %12 = vector.shape_cast %11 : vector<1x72x128xf32> to vector<72x128xf32>
    %cst_9 = arith.constant dense<0.000000e+00> : vector<16x128xf32>
    %13 = tpu.matmul %10, %12, %cst_9 {dimension_numbers = #tpu.dot_dimension_numbers<[1], [0], [0], [1], [0, 0, 1, 1], [], []>} : vector<16x72xf32>, vector<72x128xf32>, vector<16x128xf32> -> vector<16x128xf32>
    %14 = arith.addf %9, %13 : vector<16x128xf32>
    %15 = vector.extract_strided_slice %5 {offsets = [2, 0], sizes = [16, 72], strides = [1, 1]} : vector<18x72xf32> to vector<16x72xf32>
    %c2 = arith.constant 2 : index
    %c0_10 = arith.constant 0 : index
    %c0_11 = arith.constant 0 : index
    %16 = vector.load %arg2[%c2, %c0_10, %c0_11] : memref<3x72x128xf32, #tpu.memory_space<vmem>>, vector<1x72x128xf32>
    %17 = vector.shape_cast %16 : vector<1x72x128xf32> to vector<72x128xf32>
    %cst_12 = arith.constant dense<0.000000e+00> : vector<16x128xf32>
    %18 = tpu.matmul %15, %17, %cst_12 {dimension_numbers = #tpu.dot_dimension_numbers<[1], [0], [0], [1], [0, 0, 1, 1], [], []>} : vector<16x72xf32>, vector<72x128xf32>, vector<16x128xf32> -> vector<16x128xf32>
    %19 = arith.addf %14, %18 : vector<16x128xf32>
    %c0_13 = arith.constant 0 : index
    %c0_14 = arith.constant 0 : index
    %c0_15 = arith.constant 0 : index
    %20 = vector.load %arg4[%c0_13, %c0_14, %c0_15] : memref<1x16x128xf32, #tpu.memory_space<vmem>>, vector<1x16x128xf32>
    %21 = vector.shape_cast %20 : vector<1x16x128xf32> to vector<16x128xf32>
    %22 = vector.shape_cast %19 : vector<16x128xf32> to vector<1x16x128xf32>
    tpu.vector_store %arg4[%c0_13, %c0_14, %c0_15], %22 {strides = array<i32>} : memref<1x16x128xf32, #tpu.memory_space<vmem>>, vector<1x16x128xf32>,
    %cst_16 = arith.constant dense<0.000000e+00> : vector<128xf32>
    %23 = vector.multi_reduction <add>, %19, %cst_16 [0] : vector<16x128xf32> to vector<128xf32>
    %24 = vector.shape_cast %23 : vector<128xf32> to vector<1x128xf32>
    %25 = arith.mulf %19, %19 : vector<16x128xf32>
    %cst_17 = arith.constant dense<0.000000e+00> : vector<128xf32>
    %26 = vector.multi_reduction <add>, %25, %cst_17 [0] : vector<16x128xf32> to vector<128xf32>
    %27 = vector.shape_cast %26 : vector<128xf32> to vector<1x128xf32>
    %28 = tpu.concatenate %24, %27 in 0 : vector<1x128xf32>, vector<1x128xf32> -> vector<2x128xf32>
    %c0_18 = arith.constant 0 : index
    %c0_19 = arith.constant 0 : index
    %29 = vector.load %arg3[%c0_18, %c0_19] : memref<128x8xf32, #tpu.memory_space<vmem>>, vector<128x8xf32>
    %cst_20 = arith.constant dense<0.000000e+00> : vector<2x8xf32>
    %30 = tpu.matmul %28, %29, %cst_20 {dimension_numbers = #tpu.dot_dimension_numbers<[1], [0], [0], [1], [0, 0, 1, 1], [], []>} : vector<2x128xf32>, vector<128x8xf32>, vector<2x8xf32> -> vector<2x8xf32>
    %c0_21 = arith.constant 0 : index
    %c0_22 = arith.constant 0 : index
    %c0_23 = arith.constant 0 : index
    %31 = vector.load %arg5[%c0_21, %c0_22, %c0_23] : memref<1x2x8xf32, #tpu.memory_space<vmem>>, vector<1x2x8xf32>
    %32 = vector.shape_cast %31 : vector<1x2x8xf32> to vector<2x8xf32>
    %33 = vector.shape_cast %30 : vector<2x8xf32> to vector<1x2x8xf32>
    tpu.vector_store %arg5[%c0_21, %c0_22, %c0_23], %33 {strides = array<i32>} : memref<1x2x8xf32, #tpu.memory_space<vmem>>, vector<1x2x8xf32>,
    return
  }
  func.func @transform_0(%arg0: i32) -> (i32, i32, i32) {
    %c0_i32 = arith.constant 0 : i32
    %c0_i32_0 = arith.constant 0 : i32
    %c0_i32_1 = arith.constant 0 : i32
    return %arg0, %c0_i32, %c0_i32_0 : i32, i32, i32
  }
  func.func @transform_1(%arg0: i32) -> (i32, i32, i32) {
    %c0_i32 = arith.constant 0 : i32
    %c0_i32_0 = arith.constant 0 : i32
    %c0_i32_1 = arith.constant 0 : i32
    %c0_i32_2 = arith.constant 0 : i32
    return %c0_i32, %c0_i32_0, %c0_i32_1 : i32, i32, i32
  }
  func.func @transform_2(%arg0: i32) -> (i32, i32) {
    %c0_i32 = arith.constant 0 : i32
    %c0_i32_0 = arith.constant 0 : i32
    %c0_i32_1 = arith.constant 0 : i32
    return %c0_i32, %c0_i32_0 : i32, i32
  }
  func.func @transform_3(%arg0: i32) -> (i32, i32, i32) {
    %c0_i32 = arith.constant 0 : i32
    %c0_i32_0 = arith.constant 0 : i32
    %c0_i32_1 = arith.constant 0 : i32
    return %arg0, %c0_i32, %c0_i32_0 : i32, i32, i32
  }
  func.func @transform_4(%arg0: i32) -> (i32, i32, i32) {
    %c0_i32 = arith.constant 0 : i32
    %c0_i32_0 = arith.constant 0 : i32
    %c0_i32_1 = arith.constant 0 : i32
    return %arg0, %c0_i32, %c0_i32_0 : i32, i32, i32
  }
}

</mosaic_0001>

<bundles_post_ra>
// kernel: tpu_custom_call.1
= control target key start
LH: loop header
LB: loop body
LE: loop exit
PB: predicated region body
PF: predicated region fallthrough
CT: control target
= control target key end

     0   :  { %10 = vsyncpa [#allocation3], 0  ;;  %s1486_s0 = inlined_call_operand.vmem [shape: f32[2,16,64], index: 0, kind: input, shape index: {}]   ;;  %s1487_s1 = inlined_call_operand.hbm [shape: f32[3,72,128], index: 1, kind: input, shape index: {}]   ;;  %s1488_s2 = inlined_call_operand.vmem [shape: f32[128,8], index: 2, kind: input, shape index: {}]   ;;  %s1489_s3 = inlined_call_operand.hbm [shape: f32[2,16,128], index: 3, kind: output, shape index: {0}]   ;;  %s1490_s4 = inlined_call_operand.hbm [shape: f32[2,2,8], index: 4, kind: output, shape index: {1}]  }
   0x1   :  { %11 = vsyncpa [#allocation4], 0 }
   0x2   :  { %13 = vsyncpa [#allocation4 + $0x1], 0 }
   0x3   :  { %14 = vsyncpa [#allocation7], 0 }
   0x4   :  { %16 = vsyncpa [#allocation7 + $0x1], 0  ;;  %s1252_s15 = smov 0   ;;  %s1254_s16 = smov 0  }
   0x5   :  { %s1256_s17 = smov 0   ;;  %s1258_s18 = smov 0  }
   0x6 LB: > { %s1273_s19 = sadd.s32 4294967295, %s1214_s18   ;;  %s776_s20 = sadd.s32 4294967294, %s1214_s18   ;;  %s1214_s18 = sphi %s1258_s18, %s1506_s18   ;;  %s1210_s17 = sphi %s1256_s17, %s1505_s17   ;;  %s1206_s16 = sphi %s1254_s16, %s1504_s16   ;;  %s1202_s15 = sphi %s1252_s15, %s1503_s15  }
   0x7   : > { %s1277_s21 = sadd.s32 1, %s1214_s18   ;;  %s97_s22 = sadd.s32 1, %s1210_s17 }
   0x8   : > { %s94_s23 = ssub.s32 %s1214_s18, %s1277_s21  ;;  %p107_p0 = scmp.ne.s32.totalorder %s1210_s17, %s1206_s16 }
   0x9   : > { %p95_p1 = scmp.eq.s32.totalorder %s94_s23, 0  ;;  %p108_p2 = scmp.eq.s32.totalorder %s1273_s19, 1 }
   0xa   : > { %p113_p3 = scmp.ne.s32.totalorder %s1206_s16, %s1202_s15  ;;  %p114_p4 = scmp.eq.s32.totalorder %s776_s20, 1 }
   0xb   : > { %s1288_s24 = scalar_select %p95_p1, %s1210_s17, %s97_s22  }
   0xc   : > { %p1290_p5 = por %p108_p2, %p107_p0  ;;  %p1294_p6 = por %p114_p4, %p113_p3 }
   0xd   : > { %p777_p7 = scmp.ge.s32.totalorder %s1214_s18, 1  ;;  %p147_p8 = scmp.lt.s32.totalorder %s1214_s18, 3 }
   0xe   : > { %s1494_s25 = scalar_select %p1290_p5, 1, 0 }
   0xf   : > { %s1495_s26 = scalar_select %p1294_p6, 1, 0 }
  0x10   : > { %p1491_p9 = scmp.eq.s32.totalorder %s1273_s19, 0  ;;  %p1301_p10 = pnand %p777_p7, %p147_p8 }
  0x11   : > { %s1216_s28 = smov [#allocation2]   ;;  %s1088_s7 = scalar_lea.hbm %s1487_s1, 3456 }
  0x12   : > { %s1496_s27 = scalar_select %p1301_p10, 1, 0 }
  0x13   : > { %s159_s29 = sshll.u32 %s1216_s28, 4  ;;  %p1033_p11 = pneg %p1301_p10  ;;  %s160_s29 = int_to_ptr.vmem [resolvable:$true] %s159_s29 }
  0x14   : > { %p1089_p13 = scmp.ne.s32.totalorder %s1487_s1, %s1088_s7  ;;  %p1095_p3 = scmp.lt.u32.totalorder %s1088_s7, %s1487_s1 }
  0x15   : > { %p1309_p12 = pnand %p1491_p9, %p1033_p11 }
  0x17   : > { %p1090_p0 = pneg %p1309_p12 }
  0x19   : > { %p1091_p1 = pnand %p1090_p0, %p1089_p13 }
  0x1b   : > { %p1092_p2 = pneg %p1091_p1 }
  0x1d   : > { %p1097_p4 = pnand %p1095_p3, %p1092_p2 }
  0x1f   : > { %1100 = shalt.err (!%p1097_p4)
}
  0x20   : > { %s1101_s12 = scalar_lea.vmem %s160_s29, 3456  ;;  %p1109_p9 = scmp.lt.s32.totalorder %s160_s29, %s160_s29 }
  0x21   : > { %p1102_p7 = scmp.ne.s32.totalorder %s160_s29, %s1101_s12  ;;  %p1110_p6 = scmp.lt.s32.totalorder %s1101_s12, %s1101_s12 }
  0x23   : > { %p1104_p8 = pnand %p1102_p7, %p1090_p0  ;;  %p1111_p5 = por %p1110_p6, %p1109_p9 }
  0x25   : > { %p1105_p11 = pneg %p1104_p8 }
  0x27   : > { %p1112_p10 = pnand %p1111_p5, %p1105_p11 }
  0x29   : > { %1115 = shalt.err (!%p1112_p10)
}
  0x2a   : > { %s1217_s13 = smov 128   ;;  %s1218_s14 = smov 8  }
  0x2b   : > { %1036 = dma.hbm_to_vmem [thread:$0]  (!%p1309_p12), %s1487_s1, 3456, %s160_s29, [#allocation3], %s1217_s13, %s1217_s13, %s1218_s14  }
  0x2c   : > { %p1498_p13 = scmp.ne.s32.totalorder %s1496_s27, 0 }
  0x2d   : > { %p1499_p1 = scmp.eq.s32.totalorder (!%p1498_p13), %s1273_s19, 0 }
  0x2e   : > { %186 = sbr.rel (%p1498_p13) target bundleno = 661 (0x295), region = 32 }
  0x35   : > { %1189 = dma.done.wait (%p1499_p1), [#allocation3], 3456   ;;  %p1500_p0 = pmov %p1499_p1 }
  0x36   : > { %p217_p5 = scmp.lt.s32.totalorder %s1273_s19, 1  ;;  %v248_v2 = vld [vmem:[#allocation2] sm:$0xff]  ;;  %s1219_s27 = smov 4   ;;  %v249_v3 = vld [vmem:[#allocation2 + $0x8] sm:$0xff]  ;;  %v250_v4 = vld [vmem:[#allocation2 + $0x10] sm:$0xff]  ;;  %vm232_vm0 = vcmask 31744  }
  0x37   : > { %1191 = vsyncadd (%p1500_p0), [#allocation3], 4294963840  ;;  %v251_v5 = vld [vmem:[#allocation2 + $0x18] sm:$0xff]  ;;  %v965_v6 = vpack.c.bf16 %v249_v3, %v248_v2  ;;  %v258_v8 = vld [vmem:[#allocation2 + $0x48] sm:$0xff]  ;;  %vm235_vm1 = vcmask 556032   ;;  %vm240_vm2 = vcmask 1040384  }
  0x38   : > { %s218_s23 = scalar_select %p217_p5, %s1273_s19, 1  ;;  %v969_v7 = vpack.c.bf16 %v251_v5, %v250_v4  ;;  %v259_v9 = vld [vmem:[#allocation2 + $0x50] sm:$0xff]  ;;  %v252_v10 = vld [vmem:[#allocation2 + $0x20] sm:$0xff]  ;;  %v253_v12 = vld [vmem:[#allocation2 + $0x28] sm:$0xff]  ;;  %vm275_vm3 = vcmask 588800   ;;  %vm269_vm4 = vcmask 1046528  }
  0x39   : > { %v949_v11 = vpack.c.bf16 %v259_v9, %v258_v8  ;;  %v260_v13 = vld [vmem:[#allocation2 + $0x58] sm:$0xff]  ;;  %v261_v14 = vld [vmem:[#allocation2 + $0x60] sm:$0xff]  ;;  %966 = vmatprep.subr.bf16.mxu0 %v965_v6  ;;  %v262_v16 = vld [vmem:[#allocation2 + $0x68] sm:$0xff]  ;;  %v973_v18 = vpack.c.bf16 %v253_v12, %v252_v10  ;;  %vm444_vm5 = vcmask 1045504   ;;  %vm1221_vm6 = vmmov 0   ;;  %s800_s8 = sshll.u32 %s1273_s19, 8 }
  0x3a   : > { %s799_s28 = sshll.u32 %s218_s23, 4  ;;  %v953_v15 = vpack.c.bf16 %v261_v14, %v260_v13  ;;  %968 = vmatpush3.bf16.msra.mxu0 %v965_v6  ;;  %v263_v17 = vld [vmem:[#allocation2 + $0x70] sm:$0xff]  ;;  %v255_v20 = vld [vmem:[#allocation2 + $0x38] sm:$0xff]  ;;  %v265_v23 = vld [vmem:[#allocation2 + $0x80] sm:$0xff]  ;;  %s1412_s11 = scalar_lea.hbm %s1489_s3, %s800_s8 }
  0x3b   : > { %s221_s6 = scalar_lea.vmem %s1486_s0, %s799_s28  ;;  %970 = vmatprep.subr.bf16.mxu0 %v969_v7  ;;  %950 = vmatprep.subr.bf16.mxu1 %v949_v11  ;;  %v254_v19 = vld [vmem:[#allocation2 + $0x30] sm:$0xff]  ;;  %v957_v21 = vpack.c.bf16 %v263_v17, %v262_v16  ;;  %v264_v22 = vld [vmem:[#allocation2 + $0x78] sm:$0xff]  ;;  %v256_v26 = vld [vmem:[#allocation2 + $0x40] sm:$0xff]  ;;  %p1501_p9 = scmp.ne.s32.totalorder %s1494_s25, 0 }
  0x3c   : > { %v222_v0 = vld [vmem:[%s221_s6] sm:$0xff]  ;;  %v223_v1 = vld [vmem:[%s221_s6 + $0x8] sm:$0xff]  ;;  %952 = vmatpush3.bf16.msra.mxu1 %v949_v11  ;;  %v977_v24 = vpack.c.bf16 %v255_v20, %v254_v19  ;;  %v961_v25 = vpack.c.bf16 %v265_v23, %v264_v22  ;;  %v435_v27 = vld [vmem:[#allocation2 + $0x90] sm:$0xff]  ;;  %v1222_v22 = vmov 0.0   ;;  %s1402_s6 = sand.u32 1, %s1206_s16   ;;  %s1223_s14 = smov [#allocation5]  }
  0x3d   : > { %226 = vrot.lane.b32.xlu0 %v222_v0, %s1219_s27  ;;  %954 = vmatprep.subr.bf16.mxu1 %v953_v15  ;;  %v436_v28 = vld [vmem:[#allocation2 + $0x98] sm:$0xff]  ;;  %v266_v29 = vld [vmem:[#allocation2 + $0x88] sm:$0xff]  ;;  %v437_v38 = vld [vmem:[#allocation2 + $0xa0] sm:$0xff]  ;;  %s639_s12 = scalar_lea.sflag [#allocation4], %s1402_s6  ;;  %s1120_s20 = sshll.u32 %s1223_s14, 4  ;;  %s1121_s20 = int_to_ptr.vmem [resolvable:$false] %s1120_s20 }
  0x3e   : > { %972 = vmatpush3.bf16.msra.mxu0 %v969_v7  ;;  %v981_v30 = vpack.c.bf16 %v436_v28, %v435_v27  ;;  %v438_v39 = vld [vmem:[#allocation2 + $0xa8] sm:$0xff]  ;;  %v439_v46 = vld [vmem:[#allocation2 + $0xb0] sm:$0xff]  ;;  %v440_v47 = vld [vmem:[#allocation2 + $0xb8] sm:$0xff]  ;;  %s1122_s22 = scalar_lea.vmem %s1121_s20, 512 }
  0x3f   : > { %974 = vmatprep.subr.bf16.mxu0 %v973_v18  ;;  %v985_v42 = vpack.c.bf16 %v438_v39, %v437_v38  ;;  %v989_v55 = vpack.c.bf16 %v440_v47, %v439_v46  ;;  %v441_v56 = vld [vmem:[#allocation2 + $0xc0] sm:$0xff]  ;;  %v442_v57 = vld [vmem:[#allocation2 + $0xc8] sm:$0xff]  ;;  %v443_v59 = vld [vmem:[#allocation2 + $0xd0] sm:$0xff] }
  0x40   : > { %956 = vmatpush3.bf16.msra.mxu1 %v953_v15  ;;  %v993_v58 = vpack.c.bf16 %v442_v57, %v441_v56  ;;  %v550_v62 = vld [vmem:[%s1488_s2] sm:$0xff]  ;;  %v551_v63 = vld [vmem:[%s1488_s2 + $0x8] sm:$0xff]  ;;  %v552_v0 = vld [vmem:[%s1488_s2 + $0x10] sm:$0xff] }
  0x41   : > { %228 = vrot.lane.b32.xlu0 %v223_v1, %s1219_s27  ;;  %958 = vmatprep.subr.bf16.mxu1 %v957_v21  ;;  %v1220_v1 = vmov 0.0|0.0   ;;  %v998_v2 = vpack.c.bf16 %v551_v63, %v550_v62  ;;  %v553_v3 = vld [vmem:[%s1488_s2 + $0x18] sm:$0xff]  ;;  %v554_v5 = vld [vmem:[%s1488_s2 + $0x20] sm:$0xff]  ;;  %v555_v6 = vld [vmem:[%s1488_s2 + $0x28] sm:$0xff]  ;;  %s782_s27 = sshll.u32 %s1402_s6, 4 }
  0x42   : > { %976 = vmatpush3.bf16.msra.mxu0 %v973_v18  ;;  %v1001_v4 = vpack.c.bf16 %v553_v3, %v552_v0  ;;  %v1004_v7 = vpack.c.bf16 %v555_v6, %v554_v5  ;;  %v556_v8 = vld [vmem:[%s1488_s2 + $0x30] sm:$0xff]  ;;  %v557_v9 = vld [vmem:[%s1488_s2 + $0x38] sm:$0xff]  ;;  %v558_v11 = vld [vmem:[%s1488_s2 + $0x40] sm:$0xff]  ;;  %s209_s29 = scalar_lea.vmem [#allocation5], %s782_s27 }
  0x43   : > { %978 = vmatprep.subr.bf16.mxu0 %v977_v24  ;;  %v1007_v10 = vpack.c.bf16 %v557_v9, %v556_v8  ;;  %v559_v12 = vld [vmem:[%s1488_s2 + $0x48] sm:$0xff]  ;;  %v560_v14 = vld [vmem:[%s1488_s2 + $0x50] sm:$0xff]  ;;  %v561_v15 = vld [vmem:[%s1488_s2 + $0x58] sm:$0xff]  ;;  %s657_s7 = sshll.u32 %s209_s29, 4  ;;  %s1406_s7 = int_to_ptr.vmem [resolvable:$true] %s657_s7 }
  0x44   : > { %960 = vmatpush3.bf16.msra.mxu1 %v957_v21  ;;  %v1010_v13 = vpack.c.bf16 %v559_v12, %v558_v11  ;;  %v1013_v16 = vpack.c.bf16 %v561_v15, %v560_v14  ;;  %v562_v17 = vld [vmem:[%s1488_s2 + $0x60] sm:$0xff]  ;;  %v563_v18 = vld [vmem:[%s1488_s2 + $0x68] sm:$0xff]  ;;  %v564_v20 = vld [vmem:[%s1488_s2 + $0x70] sm:$0xff]  ;;  %s1116_s13 = scalar_lea.vmem %s1406_s7, 256  ;;  %p1123_p2 = scmp.lt.s32.totalorder %s1406_s7, %s1121_s20 }
  0x45   : > { %962 = vmatprep.subr.bf16.mxu1 %v961_v25  ;;  %v1016_v19 = vpack.c.bf16 %v563_v18, %v562_v17  ;;  %v565_v21 = vld [vmem:[%s1488_s2 + $0x78] sm:$0xff]  ;;  %p1117_p6 = scmp.ne.s32.totalorder %s1406_s7, %s1116_s13  ;;  %p1124_p3 = scmp.lt.s32.totalorder %s1122_s22, %s1116_s13 }
  0x46   : > { %980 = vmatpush3.bf16.msra.mxu0 %v977_v24  ;;  %v1019_v23 = vpack.c.bf16 %v565_v21, %v564_v20 }
  0x47   : > { %888 = vmatprep.subr.mxu0 %v256_v26  ;;  %p1118_p10 = pnand %p1117_p6, %p1501_p9  ;;  %p1125_p4 = por %p1124_p3, %p1123_p2 }
  0x48   : > { %964 = vmatpush3.bf16.msra.mxu1 %v961_v25 }
  0x49   : > { %867 = vmatprep.subr.mxu1 %v266_v29  ;;  %p1119_p12 = pneg %p1118_p10 }
  0x4a   : > { %889 = vmatpush3.msra.mxu0 %v256_v26 }
  0x4b   : > { %982 = vmatprep.subr.bf16.mxu0 %v981_v30  ;;  %p1126_p7 = pnand %p1125_p4, %p1119_p12 }
  0x4c   : > { %868 = vmatpush3.msra.mxu1 %v266_v29 }
  0x4d   : > { %997 = vmatprep.subr.bf16.mxu1 %v1220_v1 }
  0xaf   : > { %v227_v31 = vpop.permute.xlu0 %226 }
  0xb0   : > { %v233_v32 = vsel %vm232_vm0, 0.0, %v227_v31 }
  0xb1   : > { %v236_v33 = vsel %vm235_vm1, %v233_v32, 0.0 }
  0xb2   : > { %v241_v34 = vrot.slane %v236_v33, 7 }
  0xb3   : > { %v229_v35 = vpop.permute.xlu0 %228 }
  0xb4   : > { %v234_v36 = vsel %vm232_vm0, 0.0, %v229_v35  ;;  %v246_v37 = vsel %vm240_vm2, 0.0, %v241_v34 }
  0xb5   : > { %v237_v40 = vsel %vm235_vm1, %v234_v36, 0.0  ;;  %890 = vmatprep.mubr.msk.f32.mxu0 %vm275_vm3, %v246_v37  ;;  %v270_v44 = vrot.slane %v246_v37, 1  ;;  %v445_v49 = vrot.slane %v246_v37, 2 }
  0xb6   : > { %v242_v41 = vrot.slane %v237_v40, 7 }
  0xb8   : > { %v247_v43 = vsel %vm240_vm2, %v242_v41, 0.0  ;;  %v243_v45 = vsel %vm240_vm2, %v241_v34, %v242_v41 }
  0xb9   : > { %v273_v48 = vrot.slane %v247_v43, 1  ;;  %891 = vmatmul.mubr.msk.f32.vlgmr.msra.gmra.mrb[0].mxu0 %vm275_vm3, %v243_v45  ;;  %v446_v50 = vrot.slane %v243_v45, 2  ;;  %v271_v51 = vrot.slane %v243_v45, 1  ;;  %v448_v60 = vrot.slane %v247_v43, 2 }
  0xba   : > { %984 = vmatpush3.bf16.msra.mxu0 %v981_v30 }
  0xbb   : > { %v272_v52 = vsel %vm269_vm4, %v270_v44, %v271_v51  ;;  %986 = vmatprep.subr.bf16.mxu0 %v985_v42  ;;  %v447_v53 = vsel %vm444_vm5, %v445_v49, %v446_v50  ;;  %v274_v54 = vsel %vm269_vm4, %v271_v51, %v273_v48  ;;  %v449_v61 = vsel %vm444_vm5, %v446_v50, %v448_v60 }
  0xbc   : > { %869 = vmatprep.mubr.msk.f32.mxu1 %vm275_vm3, %v272_v52  ;;  %911 = vmatprep.mubr.msk.f32.mxu0 %vm275_vm3, %v447_v53 }
  0xbd   : > { %870 = vmatmul.mubr.msk.f32.vlgmr.msra.gmra.mrb[0].mxu1 %vm275_vm3, %v274_v54 }
  0xbe   : > { %988 = vmatpush3.bf16.msra.mxu0 %v985_v42  ;;  %999 = vmatpush3.bf16.msra.mxu1 %v998_v2 }
  0xbf   : > { %990 = vmatprep.subr.bf16.mxu0 %v989_v55  ;;  %1000 = vmatprep.subr.bf16.mxu1 %v1220_v1 }
  0xc0   : > { %946 = vmatprep.mubr.msk.f32.mxu1 %vm1221_vm6, %v1222_v22 }
  0xc2   : > { %992 = vmatpush3.bf16.msra.mxu0 %v989_v55  ;;  %1002 = vmatpush3.bf16.msra.mxu1 %v1001_v4 }
  0xc3   : > { %994 = vmatprep.subr.bf16.mxu0 %v993_v58  ;;  %1003 = vmatprep.subr.bf16.mxu1 %v1220_v1 }
  0xc6   : > { %996 = vmatpush3.bf16.msra.mxu0 %v993_v58  ;;  %1005 = vmatpush3.bf16.msra.mxu1 %v1004_v7 }
  0xc7   : > { %909 = vmatprep.subr.mxu0 %v443_v59  ;;  %1006 = vmatprep.subr.bf16.mxu1 %v1220_v1 }
  0xca   : > { %910 = vmatpush3.msra.mxu0 %v443_v59  ;;  %1008 = vmatpush3.bf16.msra.mxu1 %v1007_v10 }
  0xcb   : > { %912 = vmatmul.mubr.msk.f32.vlgmr.msra.gmra.mrb[0].mxu0 %vm275_vm3, %v449_v61  ;;  %1009 = vmatprep.subr.bf16.mxu1 %v1220_v1 }
  0xce   : > { %1011 = vmatpush3.bf16.msra.mxu1 %v1010_v13 }
  0xcf   : > { %1012 = vmatprep.subr.bf16.mxu1 %v1220_v1 }
  0xd2   : > { %1014 = vmatpush3.bf16.msra.mxu1 %v1013_v16 }
  0xd3   : > { %1015 = vmatprep.subr.bf16.mxu1 %v1220_v1 }
  0xd6   : > { %1017 = vmatpush3.bf16.msra.mxu1 %v1016_v19 }
  0xd7   : > { %1018 = vmatprep.subr.bf16.mxu1 %v1220_v1 }
  0xda   : > { %1020 = vmatpush3.bf16.msra.mxu1 %v1019_v23 }
 0x190   : > { %v871_v24 = vpop.f32.mrb[0].mxu1 }
 0x191   : > { %v346_v25 = vpop.f32.mrb[1].mxu1 }
 0x19e   : > { %v913_v26 = vpop.f32.mrb[0].mxu0 }
 0x19f   : > { %v1021_v27 = vadd.f32 %v913_v26, %v871_v24  ;;  %v520_v28 = vpop.f32.mrb[1].mxu0 }
 0x1a0   : > { %v1022_v29 = vadd.f32 %v520_v28, %v346_v25 }
 0x1a1   : > { %532 = vst [vmem:[%s209_s29 + $0x8] sm:$0xff] %v1021_v27  ;;  %v541_v30 = vmul.f32 %v1021_v27, %v1021_v27 }
 0x1a2   : > { %531 = vst [vmem:[%s209_s29] sm:$0xff] %v1022_v29  ;;  %v533_v31 = vadd.f32 %v1022_v29, %v1021_v27  ;;  %v540_v32 = vmul.f32 %v1022_v29, %v1022_v29 }
 0x1a4   : > { %v534_v33 = vrot.slane %v533_v31, 4  ;;  %v542_v34 = vadd.f32 %v541_v30, %v540_v32 }
 0x1a6   : > { %v535_v35 = vadd.f32 %v534_v33, %v533_v31  ;;  %v543_v36 = vrot.slane %v542_v34, 4 }
 0x1a8   : > { %v536_v37 = vrot.slane %v535_v35, 2  ;;  %v544_v38 = vadd.f32 %v543_v36, %v542_v34 }
 0x1aa   : > { %v537_v39 = vadd.f32 %v536_v37, %v535_v35  ;;  %v545_v40 = vrot.slane %v544_v38, 2 }
 0x1ac   : > { %v538_v41 = vrot.slane %v537_v39, 1  ;;  %v546_v42 = vadd.f32 %v545_v40, %v544_v38 }
 0x1ae   : > { %v547_v43 = vrot.slane %v546_v42, 1  ;;  %v539_v44 = vadd.f32 %v538_v41, %v537_v39 }
 0x1b0   : > { %v548_v45 = vadd.f32 %v547_v43, %v546_v42 }
 0x1b2   : > { %v549_v46 = vsel %vm240_vm2, %v539_v44, %v548_v45 }
 0x1b3   : > { %947 = vmatmul.mubr.f32.vlgmr.msra.gmra.mrb[2].mxu1 %v549_v46 }
 0x1b4   : > { %1129 = shalt.err (!%p1126_p7)
}
 0x1b5   : > { %s1130_s23 = scalar_lea.hbm %s1412_s11, 256  ;;  %s1134_s30 = scalar_lea.hbm %s1489_s3, 512 }
 0x1b6   : > { %p1131_p8 = scmp.ne.s32.totalorder %s1412_s11, %s1130_s23  ;;  %p1135_p1 = scmp.lt.u32.totalorder %s1412_s11, %s1489_s3 }
 0x1b7   : > { %p1136_p0 = scmp.lt.u32.totalorder %s1134_s30, %s1130_s23  ;;  %p1138_p6 = scmp.lt.u32.totalorder %s1130_s23, %s1412_s11 }
 0x1b8   : > { %p1132_p11 = pnand %p1131_p8, %p1501_p9 }
 0x1b9   : > { %p1137_p5 = por %p1136_p0, %p1135_p1 }
 0x1ba   : > { %p1133_p13 = pneg %p1132_p11 }
 0x1bb   : > { %p1139_p10 = por %p1138_p6, %p1137_p5 }
 0x1bd   : > { %p1140_p12 = pnand %p1139_p10, %p1133_p13 }
 0x1bf   : > { %1143 = shalt.err (!%p1140_p12)
}
 0x1c0   : > { %s1224_s8 = smov 128   ;;  %s1225_s9 = smov 8   ;;  %vm636_vm7 = vcmask 58368  }
 0x1c1   : > { %1029 = dma.vmem_to_hbm [thread:$0]  (%p1501_p9), %s1406_s7, 256, %s1412_s11, %s639_s12, %s1224_s8, %s1224_s8, %s1225_s9  }
 0x1c2   : > { %s783_s10 = sshll.u32 %s1402_s6, 1  ;;  %s796_s13 = sshll.u32 %s1273_s19, 5 }
 0x1c3   : > { %s216_s14 = scalar_lea.vmem [#allocation6], %s783_s10  ;;  %s1443_s28 = scalar_lea.hbm %s1490_s4, %s796_s13 }
 0x1c4   : > { %s673_s20 = sshll.u32 %s216_s14, 4  ;;  %s644_s5 = scalar_lea.sflag [#allocation7], %s1402_s6  ;;  %s1445_s20 = int_to_ptr.vmem [resolvable:$true] %s673_s20 }
 0x1c5   : > { %s1144_s7 = scalar_lea.vmem %s1445_s20, 32  ;;  %s1226_s19 = smov [#allocation6]  }
 0x1c6   : > { %p1145_p2 = scmp.ne.s32.totalorder %s1445_s20, %s1144_s7  ;;  %s1148_s11 = sshll.u32 %s1226_s19, 4  ;;  %s1149_s11 = int_to_ptr.vmem [resolvable:$false] %s1148_s11 }
 0x1c7   : > { %s1150_s12 = scalar_lea.vmem %s1149_s11, 64  ;;  %p1151_p7 = scmp.lt.s32.totalorder %s1445_s20, %s1149_s11 }
 0x1c8   : > { %p1146_p3 = pnand %p1145_p2, %p1501_p9  ;;  %p1152_p8 = scmp.lt.s32.totalorder %s1150_s12, %s1144_s7 }
 0x1ca   : > { %p1147_p4 = pneg %p1146_p3  ;;  %p1153_p11 = por %p1152_p8, %p1151_p7 }
 0x1cc   : > { %p1154_p13 = pnand %p1153_p11, %p1147_p4 }
 0x286   : > { %v632_v47 = vpop.f32.mrb[2].mxu1 }
 0x287   : > { %637 = vst.msk [vmem:[%s216_s14] sm:$0x3] %vm636_vm7, %v632_v47  ;;  %v948_v48 = vpop.f32.mrb[3].mxu1 }
 0x288   : > { %1157 = shalt.err (!%p1154_p13)
}
 0x289   : > { %s1158_s6 = scalar_lea.hbm %s1443_s28, 32  ;;  %s1162_s29 = scalar_lea.hbm %s1490_s4, 64 }
 0x28a   : > { %p1159_p1 = scmp.ne.s32.totalorder %s1443_s28, %s1158_s6  ;;  %p1163_p6 = scmp.lt.u32.totalorder %s1443_s28, %s1490_s4 }
 0x28b   : > { %p1164_p10 = scmp.lt.u32.totalorder %s1162_s29, %s1158_s6  ;;  %p1166_p2 = scmp.lt.u32.totalorder %s1158_s6, %s1443_s28 }
 0x28c   : > { %p1160_p0 = pnand %p1159_p1, %p1501_p9 }
 0x28d   : > { %p1165_p12 = por %p1164_p10, %p1163_p6 }
 0x28e   : > { %p1161_p5 = pneg %p1160_p0 }
 0x28f   : > { %p1167_p3 = por %p1166_p2, %p1165_p12 }
 0x291   : > { %p1168_p4 = pnand %p1167_p3, %p1161_p5 }
 0x293   : > { %1171 = shalt.err (!%p1168_p4)
}
 0x294   : > { %1030 = dma.vmem_to_hbm [thread:$0]  (%p1501_p9), %s1445_s20, 32, %s1443_s28, %s644_s5  }
 0x295 PF: > { %p1046_p7 = scmp.ge.s32.totalorder %s1214_s18, 2  ;;  %s685_s10 = sand.u32 1, %s1202_s15  }
 0x296   : > { %p1502_p8 = scmp.ne.s32.totalorder %s1495_s26, 0  ;;  %s686_s13 = scalar_lea.sflag [#allocation4], %s685_s10 }
 0x298   : > { %p1038_p11 = pnand %p1046_p7, %p1502_p8 }
 0x29a   : > { %1193 = dma.done.wait (!%p1038_p11), %s686_s13, 256  }
 0x29b   : > { %1195 = vsyncadd (!%p1038_p11), %s686_s13, 4294967040  ;;  %s695_s14 = scalar_lea.sflag [#allocation7], %s685_s10 }
 0x29c   : > { %1197 = dma.done.wait (!%p1038_p11), %s695_s14, 32  }
 0x29d   : > { %1199 = vsyncadd (!%p1038_p11), %s695_s14, 4294967264  ;;  %p19_p9 = scmp.ge.s32.totalorder %s1277_s21, 4   ;;  %s1503_s15 = smov %s1206_s16 }
 0x29e   : > { %s1504_s16 = smov %s1210_s17  ;;  %s1505_s17 = smov %s1288_s24 }
 0x29f   : > { %s1506_s18 = smov %s1277_s21  ;;  %21 = sbr.rel (!%p19_p9) target bundleno = 6 (0x6), region = 91 }
 0x2a6   :  { %700 = vsyncpa [#allocation3], 1 }
 0x2a7   :  { %702 = vsyncpa [#allocation3 + $0x1], 1 }
 0x2a8   :  { %703 = vsyncpa [#allocation4], 1 }
 0x2a9   :  { %705 = vsyncpa [#allocation4 + $0x1], 1 }
 0x2aa   :  { %706 = vsyncpa [#allocation7], 1 }
 0x2ab   :  { %708 = vsyncpa [#allocation7 + $0x1], 1 }

</bundles_post_ra>
